<compile_context>
chip_gen: v5e
topology: v5e:2x2
jax: 0.10.0
libtpu: 0.0.40
codegen_flags: <defaults>
</compile_context>

<pallas_src>
import jax
import jax.numpy as jnp
import numpy as np
from jax.experimental import pallas as pl
from jax.experimental.pallas import tpu as pltpu


def _vmem_spec():
    return pl.BlockSpec(memory_space=pltpu.MemorySpace.VMEM)


def make_sparse_like_forward(B, Cin, H, W, Cout, K, n_cls):
    assert K == 3 and H % 2 == 0 and W % 2 == 0
    HW = H * W
    KKC = K * K * Cin

    # Wrap-around safety for the roll-based pooling: the largest selected
    # (even-y, even-x) conv position p=(H-2)*W+(W-2) must reach p+1 and p+W(+1)
    # without wrapping past the end of its 256-lane row.
    assert (H - 2) * W + (W - 2) + W + 1 < HW

    def kernel(xcol_ref, wconv_ref, cb_ref, wcat_ref, mask_ref,
               rsum_ref, ssum_ref, fcb_ref, o_ref):
        # xcol_ref  (B*KKC, HW)           im2col'd input (built in wrapper)
        # wconv_ref (B*Cout, B*KKC)       block-diagonal conv weight
        # cb_ref    (B*Cout, 1)           conv bias (tiled per batch)
        # wcat_ref  (HW, Cout*n_cls)      fc weight, pool-gather folded in
        # mask_ref  (B*Cout, Cout*n_cls)  block-diagonal (c == c') mask
        # rsum_ref  (Cout*n_cls, n_cls)   column-group (mod n_cls) summer
        # ssum_ref  (B, B*Cout)           per-batch row-block summer
        # fcb_ref   (1, n_cls)            fc bias
        # o_ref     (B, n_cls)            log-probs

        # ---- Conv2d(3x3, pad=1) + bias + ReLU: ONE matmul, M=16 K=72 N=256.
        conv = jnp.dot(wconv_ref[...], xcol_ref[...],
                       preferred_element_type=jnp.float32)     # (B*Cout, HW)
        conv = jnp.maximum(conv + cb_ref[...], 0.0)

        # ---- MaxPool2d(2) on XLU/VPU: two rolls + elementwise max.
        # pltpu.roll follows np.roll semantics: roll(x, s)[p] = x[(p - s) % n],
        # so shift = HW-1 (== -1) brings x[p+1] to p, shift = HW-W brings
        # x[p+W] to p.  The correct 2x2 window max lands at even-y/even-x
        # lanes; every other lane holds garbage that is killed below by the
        # zero rows of wcat (non-pooled positions never feed the FC).
        mx = jnp.maximum(conv, pltpu.roll(conv, HW - 1, 1))     # + horizontal
        mxy = jnp.maximum(mx, pltpu.roll(mx, HW - W, 1))        # + vertical

        # ---- SparseLinear (x @ W.T + b) with the NCHW flatten + pooled-
        # position gather folded into wcat at prep time.
        y = jnp.dot(mxy, wcat_ref[...],
                    preferred_element_type=jnp.float32)         # (B*Cout, Cout*n_cls)
        y = y * mask_ref[...]                                    # keep c == c' blocks
        z = jnp.dot(y, rsum_ref[...],
                    preferred_element_type=jnp.float32)          # (B*Cout, n_cls)
        logits = jnp.dot(ssum_ref[...], z,
                         preferred_element_type=jnp.float32)     # (B, n_cls)
        logits = logits + fcb_ref[...]

        # ---- log_softmax(dim=1)
        m = jnp.max(logits, axis=-1, keepdims=True)
        s = logits - m
        lse = jnp.log(jnp.sum(jnp.exp(s), axis=-1, keepdims=True))
        o_ref[...] = s - lse

    @jax.jit
    def forward(x_nchw, prep):
        # Wrapper-side im2col (input is only 8 KB; XLA cost negligible).
        xp = jnp.pad(x_nchw.astype(jnp.float32),
                     ((0, 0), (0, 0), (1, 1), (1, 1)))          # (B, Cin, H+2, W+2)
        cols = [xp[:, :, ky:ky + H, kx:kx + W]
                for ky in range(K) for kx in range(K)]          # 9 x (B, Cin, H, W)
        xcol = jnp.stack(cols, axis=1)                          # (B, 9, Cin, H, W)
        xcol = xcol.reshape(B * KKC, HW)                        # rows: b, tap, cin

        return pl.pallas_call(
            kernel,
            out_shape=jax.ShapeDtypeStruct((B, n_cls), jnp.float32),
            in_specs=[_vmem_spec()] * 8,
            out_specs=_vmem_spec(),
        )(xcol, prep["wconv"], prep["cb"], prep["wcat"], prep["mask"],
          prep["rsum"], prep["ssum"], prep["fcb"])

    return forward


def prepare_params(params, *, B, H, W):
    """One-time parameter repacking (outside the jitted hot path)."""
    conv_w = np.asarray(params["conv_w"], np.float32)   # (Cout, Cin, K, K)
    conv_b = np.asarray(params["conv_b"], np.float32)   # (Cout,)
    fc_w = np.asarray(params["fc_w"], np.float32)       # (n_cls, Cout*Ho*Wo)
    fc_b = np.asarray(params["fc_b"], np.float32)       # (n_cls,)

    Cout, Cin, K, _ = conv_w.shape
    n_cls = fc_w.shape[0]
    Ho, Wo = H // 2, W // 2
    HW = H * W
    KKC = K * K * Cin

    # Block-diagonal conv weight: row b*Cout+co contracts only against the
    # im2col rows of batch b (folds batch into one MXU matmul).
    wmat = conv_w.transpose(0, 2, 3, 1).reshape(Cout, KKC)   # [co, t*Cin+ci]
    wconv = np.zeros((B * Cout, B * KKC), np.float32)
    cb = np.zeros((B * Cout, 1), np.float32)
    for b in range(B):
        wconv[b * Cout:(b + 1) * Cout, b * KKC:(b + 1) * KKC] = wmat
        cb[b * Cout:(b + 1) * Cout, 0] = conv_b

    # FC weight with the maxpool gather + PyTorch NCHW flatten folded in:
    # pooled (c, yo, xo) lives at conv lane p = (2*yo)*W + 2*xo of row (b, c);
    # all other lanes (pooling garbage) hit zero rows.
    fcw = fc_w.T.reshape(Cout, Ho, Wo, n_cls)                # [c, yo, xo, k]
    wcat = np.zeros((HW, Cout * n_cls), np.float32)
    for c in range(Cout):
        for yo in range(Ho):
            for xo in range(Wo):
                p = (2 * yo) * W + 2 * xo
                wcat[p, c * n_cls:(c + 1) * n_cls] = fcw[c, yo, xo]

    # Block-diagonal extraction helpers: keep column block c' == row channel c,
    # sum column blocks, then sum each batch's Cout rows.
    mask = np.zeros((B * Cout, Cout * n_cls), np.float32)
    for b in range(B):
        for c in range(Cout):
            mask[b * Cout + c, c * n_cls:(c + 1) * n_cls] = 1.0
    rsum = np.zeros((Cout * n_cls, n_cls), np.float32)
    for c in range(Cout):
        rsum[c * n_cls:(c + 1) * n_cls, :] = np.eye(n_cls, dtype=np.float32)
    ssum = np.zeros((B, B * Cout), np.float32)
    for b in range(B):
        ssum[b, b * Cout:(b + 1) * Cout] = 1.0

    return {
        "wconv": jnp.asarray(wconv),
        "cb": jnp.asarray(cb),
        "wcat": jnp.asarray(wcat),
        "mask": jnp.asarray(mask),
        "rsum": jnp.asarray(rsum),
        "ssum": jnp.asarray(ssum),
        "fcb": jnp.asarray(fc_b.reshape(1, n_cls)),
    }


# ---------------------------- pure-JAX reference ----------------------------

def reference_forward(x, params):
    y = jax.lax.conv_general_dilated(
        x, params["conv_w"], window_strides=(1, 1), padding=((1, 1), (1, 1)),
        dimension_numbers=("NCHW", "OIHW", "NCHW"))
    y = jax.nn.relu(y + params["conv_b"][None, :, None, None])
    B, C, H, W = y.shape
    y = y.reshape(B, C, H // 2, 2, W // 2, 2).max(axis=(3, 5))
    y = y.reshape(B, -1)
    logits = y @ params["fc_w"].T + params["fc_b"]
    return jax.nn.log_softmax(logits, axis=1)


if __name__ == "__main__":
    key = jax.random.PRNGKey(0)
    k_x, k_cw, k_cb, k_fw, k_fb = jax.random.split(key, 5)

    B, Cin, H, W = 2, 4, 16, 16
    Cout, K = 8, 3
    n_feat = Cout * (H // 2) * (W // 2)        # 8 * 8 * 8 = 512
    n_cls = 10

    x = jax.random.normal(k_x, (B, Cin, H, W), dtype=jnp.float32)
    params = {
        "conv_w": jax.random.normal(k_cw, (Cout, Cin, K, K), jnp.float32) * 0.1,
        "conv_b": jax.random.normal(k_cb, (Cout,), jnp.float32) * 0.1,
        "fc_w":   jax.random.normal(k_fw, (n_cls, n_feat), jnp.float32) * 0.05,
        "fc_b":   jax.random.normal(k_fb, (n_cls,), jnp.float32) * 0.05,
    }

    prep = prepare_params(params, B=B, H=H, W=W)
    forward = make_sparse_like_forward(B, Cin, H, W, Cout, K, n_cls)

    out = jax.block_until_ready(forward(x, prep))
    ref = jax.block_until_ready(reference_forward(x, params))

    assert out.shape == (B, n_cls)
    np.testing.assert_allclose(np.asarray(out), np.asarray(ref),
                               rtol=1e-4, atol=1e-4)
    print("KERNEL_OK")
</pallas_src>

<mosaic_0001>
module attributes {stable_mosaic.version = 11 : i64} {
  func.func @kernel(%arg0: memref<72x256xf32, #tpu.memory_space<vmem>>, %arg1: memref<16x72xf32, #tpu.memory_space<vmem>>, %arg2: memref<16x1xf32, #tpu.memory_space<vmem>>, %arg3: memref<256x80xf32, #tpu.memory_space<vmem>>, %arg4: memref<16x80xf32, #tpu.memory_space<vmem>>, %arg5: memref<80x10xf32, #tpu.memory_space<vmem>>, %arg6: memref<2x16xf32, #tpu.memory_space<vmem>>, %arg7: memref<1x10xf32, #tpu.memory_space<vmem>>, %arg8: memref<2x10xf32, #tpu.memory_space<vmem>>) attributes {dimension_semantics = [], scalar_prefetch = 0 : i64, scratch_operands = 0 : i64, tpu.core_type = #tpu.core_type<tc>} {
    %c0 = arith.constant 0 : index
    %c0_0 = arith.constant 0 : index
    %0 = vector.load %arg1[%c0, %c0_0] : memref<16x72xf32, #tpu.memory_space<vmem>>, vector<16x72xf32>
    %c0_1 = arith.constant 0 : index
    %c0_2 = arith.constant 0 : index
    %1 = vector.load %arg0[%c0_1, %c0_2] : memref<72x256xf32, #tpu.memory_space<vmem>>, vector<72x256xf32>
    %cst = arith.constant dense<0.000000e+00> : vector<16x256xf32>
    %2 = tpu.matmul %0, %1, %cst {dimension_numbers = #tpu.dot_dimension_numbers<[1], [0], [0], [1], [0, 0, 1, 1], [], []>} : vector<16x72xf32>, vector<72x256xf32>, vector<16x256xf32> -> vector<16x256xf32>
    %c0_3 = arith.constant 0 : index
    %c0_4 = arith.constant 0 : index
    %3 = vector.load %arg2[%c0_3, %c0_4] : memref<16x1xf32, #tpu.memory_space<vmem>>, vector<16x1xf32>
    %4 = vector.broadcast %3 : vector<16x1xf32> to vector<16x256xf32>
    %5 = arith.addf %2, %4 : vector<16x256xf32>
    %cst_5 = arith.constant 0.000000e+00 : f32
    %6 = vector.broadcast %cst_5 : f32 to vector<16x256xf32>
    %7 = arith.maximumf %5, %6 : vector<16x256xf32>
    %c255_i32 = arith.constant 255 : i32
    %8 = tpu.dynamic_rotate %7 by %c255_i32 dim 1 : vector<16x256xf32>, i32 -> vector<16x256xf32>
    %9 = arith.maximumf %7, %8 : vector<16x256xf32>
    %c240_i32 = arith.constant 240 : i32
    %10 = tpu.dynamic_rotate %9 by %c240_i32 dim 1 : vector<16x256xf32>, i32 -> vector<16x256xf32>
    %11 = arith.maximumf %9, %10 : vector<16x256xf32>
    %c0_6 = arith.constant 0 : index
    %c0_7 = arith.constant 0 : index
    %12 = vector.load %arg3[%c0_6, %c0_7] : memref<256x80xf32, #tpu.memory_space<vmem>>, vector<256x80xf32>
    %cst_8 = arith.constant dense<0.000000e+00> : vector<16x80xf32>
    %13 = tpu.matmul %11, %12, %cst_8 {dimension_numbers = #tpu.dot_dimension_numbers<[1], [0], [0], [1], [0, 0, 1, 1], [], []>} : vector<16x256xf32>, vector<256x80xf32>, vector<16x80xf32> -> vector<16x80xf32>
    %c0_9 = arith.constant 0 : index
    %c0_10 = arith.constant 0 : index
    %14 = vector.load %arg4[%c0_9, %c0_10] : memref<16x80xf32, #tpu.memory_space<vmem>>, vector<16x80xf32>
    %15 = arith.mulf %13, %14 : vector<16x80xf32>
    %c0_11 = arith.constant 0 : index
    %c0_12 = arith.constant 0 : index
    %16 = vector.load %arg5[%c0_11, %c0_12] : memref<80x10xf32, #tpu.memory_space<vmem>>, vector<80x10xf32>
    %cst_13 = arith.constant dense<0.000000e+00> : vector<16x10xf32>
    %17 = tpu.matmul %15, %16, %cst_13 {dimension_numbers = #tpu.dot_dimension_numbers<[1], [0], [0], [1], [0, 0, 1, 1], [], []>} : vector<16x80xf32>, vector<80x10xf32>, vector<16x10xf32> -> vector<16x10xf32>
    %c0_14 = arith.constant 0 : index
    %c0_15 = arith.constant 0 : index
    %18 = vector.load %arg6[%c0_14, %c0_15] : memref<2x16xf32, #tpu.memory_space<vmem>>, vector<2x16xf32>
    %cst_16 = arith.constant dense<0.000000e+00> : vector<2x10xf32>
    %19 = tpu.matmul %18, %17, %cst_16 {dimension_numbers = #tpu.dot_dimension_numbers<[1], [0], [0], [1], [0, 0, 1, 1], [], []>} : vector<2x16xf32>, vector<16x10xf32>, vector<2x10xf32> -> vector<2x10xf32>
    %c0_17 = arith.constant 0 : index
    %c0_18 = arith.constant 0 : index
    %20 = vector.load %arg7[%c0_17, %c0_18] : memref<1x10xf32, #tpu.memory_space<vmem>>, vector<1x10xf32>
    %21 = vector.broadcast %20 : vector<1x10xf32> to vector<2x10xf32>
    %22 = arith.addf %19, %21 : vector<2x10xf32>
    %cst_19 = arith.constant dense<0xFF800000> : vector<2xf32>
    %23 = vector.multi_reduction <maximumf>, %22, %cst_19 [1] : vector<2x10xf32> to vector<2xf32>
    %24 = vector.shape_cast %23 : vector<2xf32> to vector<2x1xf32>
    %25 = vector.broadcast %24 : vector<2x1xf32> to vector<2x10xf32>
    %26 = arith.subf %22, %25 : vector<2x10xf32>
    %27 = math.exp %26 : vector<2x10xf32>
    %cst_20 = arith.constant dense<0.000000e+00> : vector<2xf32>
    %28 = vector.multi_reduction <add>, %27, %cst_20 [1] : vector<2x10xf32> to vector<2xf32>
    %29 = vector.shape_cast %28 : vector<2xf32> to vector<2x1xf32>
    %30 = math.log %29 : vector<2x1xf32>
    %31 = vector.broadcast %30 : vector<2x1xf32> to vector<2x10xf32>
    %32 = arith.subf %26, %31 : vector<2x10xf32>
    %c0_21 = arith.constant 0 : index
    %c0_22 = arith.constant 0 : index
    %33 = vector.load %arg8[%c0_21, %c0_22] : memref<2x10xf32, #tpu.memory_space<vmem>>, vector<2x10xf32>
    tpu.vector_store %arg8[%c0_21, %c0_22], %32 {strides = array<i32>} : memref<2x10xf32, #tpu.memory_space<vmem>>, vector<2x10xf32>,
    return
  }
}

</mosaic_0001>

<bundles_post_ra>
// kernel: forward.1
= control target key start
LH: loop header
LB: loop body
LE: loop exit
PB: predicated region body
PF: predicated region fallthrough
CT: control target
= control target key end

     0   :  { %v399_v6 = vmov 0   ;;  %s698_s0 = inlined_call_operand.vmem [shape: f32[72,256], index: 0, kind: input, shape index: {}]   ;;  %s699_s1 = inlined_call_operand.vmem [shape: f32[16,72], index: 1, kind: input, shape index: {}]   ;;  %s700_s2 = inlined_call_operand.vmem [shape: f32[16,1], index: 2, kind: input, shape index: {}]   ;;  %s701_s3 = inlined_call_operand.vmem [shape: f32[256,80], index: 3, kind: input, shape index: {}]   ;;  %s702_s4 = inlined_call_operand.vmem [shape: f32[16,80], index: 4, kind: input, shape index: {}]   ;;  %s703_s5 = inlined_call_operand.vmem [shape: f32[80,10], index: 5, kind: input, shape index: {}]   ;;  %s704_s6 = inlined_call_operand.vmem [shape: f32[2,16], index: 6, kind: input, shape index: {}]   ;;  %s705_s7 = inlined_call_operand.vmem [shape: f32[1,10], index: 7, kind: input, shape index: {}]   ;;  %s706_s8 = inlined_call_operand.hbm [shape: f32[2,10], index: 8, kind: output, shape index: {}]  }
   0x1   :  { %v48_v0 = vld [vmem:[%s698_s0 + $0x80] sm:$0xff]  ;;  %v49_v1 = vld [vmem:[%s698_s0 + $0x88] sm:$0xff]  ;;  %v46_v2 = vld [vmem:[%s698_s0 + $0x70] sm:$0xff]  ;;  %347 = vset.pattern.permute.xlu0 %v399_v6 }
   0x2   :  { %76 = vmatpush.msra.mxu0 %v48_v0  ;;  %99 = vmatpush.msra.mxu1 %v49_v1  ;;  %v47_v3 = vld [vmem:[%s698_s0 + $0x78] sm:$0xff]  ;;  %v44_v4 = vld [vmem:[%s698_s0 + $0x60] sm:$0xff]  ;;  %v45_v5 = vld [vmem:[%s698_s0 + $0x68] sm:$0xff] }
   0x3   :  { %v42_v7 = vld [vmem:[%s698_s0 + $0x50] sm:$0xff]  ;;  %v43_v8 = vld [vmem:[%s698_s0 + $0x58] sm:$0xff]  ;;  %v40_v9 = vld [vmem:[%s698_s0 + $0x40] sm:$0xff] }
   0x4   :  { %77 = vmatpush.msra.mxu0 %v46_v2  ;;  %100 = vmatpush.msra.mxu1 %v47_v3  ;;  %v41_v10 = vld [vmem:[%s698_s0 + $0x48] sm:$0xff]  ;;  %v50_v11 = vld [vmem:[%s700_s2] sm:$0xff] }
   0x6   :  { %78 = vmatpush.msra.mxu0 %v44_v4  ;;  %101 = vmatpush.msra.mxu1 %v45_v5 }
   0x8   :  { %79 = vmatpush.msra.mxu0 %v42_v7  ;;  %102 = vmatpush.msra.mxu1 %v43_v8 }
   0x9   :  { %13 = vsyncpa [#allocation3], 0  ;;  %v38_v12 = vld [vmem:[%s698_s0 + $0x30] sm:$0xff]  ;;  %v39_v13 = vld [vmem:[%s698_s0 + $0x38] sm:$0xff]  ;;  %54 = vperm.xlu0 %347, %v50_v11   ;;  %vm62_vm0 = vcmask 588800   ;;  %v127_v49 = vlaneseq  ;;  %s401_s27 = smov 112  }
   0xa   :  { %80 = vmatpush.msra.mxu0 %v40_v9  ;;  %103 = vmatpush.msra.mxu1 %v41_v10  ;;  %v36_v14 = vld [vmem:[%s698_s0 + $0x20] sm:$0xff]  ;;  %v37_v15 = vld [vmem:[%s698_s0 + $0x28] sm:$0xff]  ;;  %v34_v16 = vld [vmem:[%s698_s0 + $0x10] sm:$0xff]  ;;  %vm247_vm3 = vcmask 654336   ;;  %vm282_vm4 = vcmask 130048   ;;  %vm306_vm5 = vcmask 74752  }
   0xb   :  { %v35_v17 = vld [vmem:[%s698_s0 + $0x18] sm:$0xff]  ;;  %v51_v18 = vld [vmem:[%s700_s2 + $0x8] sm:$0xff]  ;;  %v32_v19 = vld [vmem:[%s698_s0] sm:$0xff]  ;;  %v576_v54 = vand.u32 127, %v127_v49  ;;  %s327_s20 = sshll.u32 %s706_s8, 4  ;;  %s328_s20 = int_to_ptr.hbm [resolvable:$true] %s327_s20 }
   0xc   :  { %81 = vmatpush.msra.mxu0 %v38_v12  ;;  %104 = vmatpush.msra.mxu1 %v39_v13  ;;  %v33_v20 = vld [vmem:[%s698_s0 + $0x8] sm:$0xff]  ;;  %v30_v21 = vld [vmem:[%s699_s1] sm:$0xff]  ;;  %s400_s0 = smov 127   ;;  %v170_v39 = vld [vmem:[%s701_s3 + $0x78] sm:$0xff] }
   0xd   :  { %v31_v22 = vld [vmem:[%s699_s1 + $0x8] sm:$0xff]  ;;  %v186_v40 = vld [vmem:[%s701_s3 + $0xf8] sm:$0xff]  ;;  %v169_v41 = vld [vmem:[%s701_s3 + $0x70] sm:$0xff]  ;;  %187 = vmatpush.msra.mxu2 %v170_v39  ;;  %vm129_vm1 = vcmp.lt.s32.totalorder %v576_v54, 127  ;;  %vm146_vm2 = vcmp.lt.s32.totalorder %v576_v54, 112 }
   0xe   :  { %82 = vmatpush.msra.mxu0 %v36_v14  ;;  %105 = vmatpush.msra.mxu1 %v37_v15  ;;  %v185_v42 = vld [vmem:[%s701_s3 + $0xf0] sm:$0xff]  ;;  %v168_v43 = vld [vmem:[%s701_s3 + $0x68] sm:$0xff]  ;;  %v167_v45 = vld [vmem:[%s701_s3 + $0x60] sm:$0xff] }
   0xf   :  { %210 = vmatpush.msra.mxu3 %v186_v40  ;;  %v184_v44 = vld [vmem:[%s701_s3 + $0xe8] sm:$0xff]  ;;  %188 = vmatpush.msra.mxu2 %v169_v41  ;;  %v183_v46 = vld [vmem:[%s701_s3 + $0xe0] sm:$0xff]  ;;  %v166_v47 = vld [vmem:[%s701_s3 + $0x58] sm:$0xff] }
  0x10   :  { %83 = vmatpush.msra.mxu0 %v34_v16  ;;  %106 = vmatpush.msra.mxu1 %v35_v17  ;;  %v182_v48 = vld [vmem:[%s701_s3 + $0xd8] sm:$0xff]  ;;  %v165_v50 = vld [vmem:[%s701_s3 + $0x50] sm:$0xff]  ;;  %v164_v52 = vld [vmem:[%s701_s3 + $0x48] sm:$0xff] }
  0x11   :  { %59 = vperm.xlu0 %347, %v51_v18   ;;  %211 = vmatpush.msra.mxu3 %v185_v42  ;;  %v181_v51 = vld [vmem:[%s701_s3 + $0xd0] sm:$0xff]  ;;  %v180_v53 = vld [vmem:[%s701_s3 + $0xc8] sm:$0xff]  ;;  %v163_v55 = vld [vmem:[%s701_s3 + $0x40] sm:$0xff] }
  0x12   :  { %84 = vmatpush.msra.mxu0 %v32_v19  ;;  %107 = vmatpush.msra.mxu1 %v33_v20  ;;  %v179_v56 = vld [vmem:[%s701_s3 + $0xc0] sm:$0xff]  ;;  %v162_v57 = vld [vmem:[%s701_s3 + $0x38] sm:$0xff]  ;;  %v161_v60 = vld [vmem:[%s701_s3 + $0x30] sm:$0xff] }
  0x13   :  { %336 = vmatmul.msk.f32.vlgmr.msra.gmra.mxu0 %vm62_vm0, %v30_v21  ;;  %338 = vmatmul.msk.f32.vlgmr.msra.gmra.mxu1 %vm62_vm0, %v30_v21  ;;  %v178_v58 = vld [vmem:[%s701_s3 + $0xb8] sm:$0xff]  ;;  %v177_v61 = vld [vmem:[%s701_s3 + $0xb0] sm:$0xff]  ;;  %v160_v0 = vld [vmem:[%s701_s3 + $0x28] sm:$0xff] }
  0x14   :  { %189 = vmatpush.msra.mxu2 %v168_v43  ;;  %212 = vmatpush.msra.mxu3 %v184_v44  ;;  %v176_v1 = vld [vmem:[%s701_s3 + $0xa8] sm:$0xff]  ;;  %v159_v6 = vld [vmem:[%s701_s3 + $0x20] sm:$0xff]  ;;  %v158_v9 = vld [vmem:[%s701_s3 + $0x18] sm:$0xff] }
  0x15   :  { %v175_v7 = vld [vmem:[%s701_s3 + $0xa0] sm:$0xff]  ;;  %v174_v10 = vld [vmem:[%s701_s3 + $0x98] sm:$0xff]  ;;  %v157_v19 = vld [vmem:[%s701_s3 + $0x10] sm:$0xff] }
  0x16   :  { %190 = vmatpush.msra.mxu2 %v167_v45  ;;  %213 = vmatpush.msra.mxu3 %v183_v46  ;;  %v173_v20 = vld [vmem:[%s701_s3 + $0x90] sm:$0xff]  ;;  %v156_v21 = vld [vmem:[%s701_s3 + $0x8] sm:$0xff] }
  0x17   :  { %v239_v46 = vld [vmem:[%s703_s5 + $0x10] sm:$0xff] }
  0x18   :  { %191 = vmatpush.msra.mxu2 %v166_v47  ;;  %214 = vmatpush.msra.mxu3 %v182_v48  ;;  %v238_v47 = vld [vmem:[%s703_s5 + $0x8] sm:$0xff]  ;;  %v237_v48 = vld [vmem:[%s703_s5] sm:$0xff] }
  0x1a   :  { %192 = vmatpush.msra.mxu2 %v165_v50  ;;  %215 = vmatpush.msra.mxu3 %v181_v51  ;;  %v233_v51 = vld [vmem:[%s702_s4] sm:$0xff] }
  0x1b   :  { %337 = vmatmul.msk.f32.gmra.mxu0 %vm62_vm0, %v31_v22  ;;  %339 = vmatmul.msk.f32.gmra.mxu1 %vm62_vm0, %v31_v22  ;;  %v172_v22 = vld [vmem:[%s701_s3 + $0x88] sm:$0xff] }
  0x1c   :  { %193 = vmatpush.msra.mxu2 %v164_v52  ;;  %216 = vmatpush.msra.mxu3 %v180_v53 }
  0x1e   :  { %194 = vmatpush.msra.mxu2 %v163_v55  ;;  %217 = vmatpush.msra.mxu3 %v179_v56  ;;  %v234_v56 = vld [vmem:[%s702_s4 + $0x8] sm:$0xff]  ;;  %s402_s4 = smov [#allocation2]  }
  0x20   :  { %195 = vmatpush.msra.mxu2 %v162_v57  ;;  %218 = vmatpush.msra.mxu3 %v178_v58 }
  0x22   :  { %196 = vmatpush.msra.mxu2 %v161_v60  ;;  %219 = vmatpush.msra.mxu3 %v177_v61  ;;  %v277_v61 = vld [vmem:[%s704_s6] sm:$0x3]  ;;  %s325_s6 = sshll.u32 %s402_s4, 4  ;;  %s326_s6 = int_to_ptr.vmem [resolvable:$true] %s325_s6 }
  0x24   :  { %197 = vmatpush.msra.mxu2 %v160_v0  ;;  %220 = vmatpush.msra.mxu3 %v176_v1 }
  0x26   :  { %198 = vmatpush.msra.mxu2 %v159_v6  ;;  %221 = vmatpush.msra.mxu3 %v175_v7 }
  0x28   :  { %199 = vmatpush.msra.mxu2 %v158_v9  ;;  %222 = vmatpush.msra.mxu3 %v174_v10 }
  0x2a   :  { %200 = vmatpush.msra.mxu2 %v157_v19  ;;  %223 = vmatpush.msra.mxu3 %v173_v20 }
  0x2c   :  { %201 = vmatpush.msra.mxu2 %v156_v21  ;;  %224 = vmatpush.msra.mxu3 %v172_v22 }
  0x7b   :  { %v55_v23 = vpop.permute.xlu0 %54 }
  0x83   :  { %v60_v31 = vpop.permute.xlu0 %59 }
  0x90   :  { %v86_v24 = vpop.f32.mrf.mxu0  ;;  %v109_v25 = vpop.f32.mrf.mxu1 }
  0x91   :  { %v514_v26 = vadd.f32 %v86_v24, %v55_v23  ;;  %v516_v27 = vadd.f32 %v109_v25, %v55_v23  ;;  %v155_v23 = vld [vmem:[%s701_s3] sm:$0xff]  ;;  %v246_v25 = vld [vmem:[%s703_s5 + $0x48] sm:$0xff] }
  0x92   :  { %v171_v24 = vld [vmem:[%s701_s3 + $0x80] sm:$0xff]  ;;  %202 = vmatpush.msra.mxu2 %v155_v23  ;;  %260 = vmatpush.msrb.mxu0 %v246_v25 }
  0x93   :  { %v115_v28 = vmax.f32 %v514_v26, 0.0  ;;  %v116_v29 = vmax.f32 %v516_v27, 0.0  ;;  %225 = vmatpush.msra.mxu3 %v171_v24  ;;  %v245_v26 = vld [vmem:[%s703_s5 + $0x40] sm:$0xff]  ;;  %v244_v27 = vld [vmem:[%s703_s5 + $0x38] sm:$0xff] }
  0x94   :  { %261 = vmatpush.msrb.mxu0 %v245_v26 }
  0x95   :  { %v348_v30 = vpack.i.bf16 %v116_v29, %v115_v28 }
  0x96   :  { %262 = vmatpush.msrb.mxu0 %v244_v27 }
  0x97   :  { %349 = vrot.lane.b32.xlu1 %v348_v30, %s400_s0  ;;  %v241_v30 = vld [vmem:[%s703_s5 + $0x20] sm:$0xff] }
  0x98   :  { %v89_v32 = vpop.f32.mrf.mxu0  ;;  %v112_v33 = vpop.f32.mrf.mxu1 }
  0x99   :  { %v524_v34 = vadd.f32 %v89_v32, %v60_v31  ;;  %v526_v35 = vadd.f32 %v112_v33, %v60_v31  ;;  %v240_v31 = vld [vmem:[%s703_s5 + $0x18] sm:$0xff] }
  0x9b   :  { %v117_v36 = vmax.f32 %v524_v34, 0.0  ;;  %v118_v37 = vmax.f32 %v526_v35, 0.0 }
  0x9d   :  { %v353_v38 = vpack.i.bf16 %v118_v37, %v117_v36 }
  0x9f   :  { %354 = vrot.lane.b32.xlu1 %v353_v38, %s400_s0 }
 0x109   :  { %v350_v59 = vpop.permute.xlu1 %349 }
 0x10a   :  { %v352_v62 = vunpack.i.h.bf16 %v350_v59  ;;  %v351_v63 = vunpack.i.l.bf16 %v350_v59 }
 0x10c   :  { %v130_v2 = vsel %vm129_vm1, %v351_v63, %v352_v62  ;;  %v132_v3 = vsel %vm129_vm1, %v352_v62, %v351_v63  ;;  %v368_v62 = vld [vmem:[%s705_s7] ss:$0 sm:$0xff] }
 0x10d   :  { %v134_v4 = vmax.f32 %v115_v28, %v130_v2  ;;  %v135_v5 = vmax.f32 %v116_v29, %v132_v3  ;;  %v243_v28 = vld [vmem:[%s703_s5 + $0x30] sm:$0xff]  ;;  %v242_v29 = vld [vmem:[%s703_s5 + $0x28] sm:$0xff] }
 0x10e   :  { %263 = vmatpush.msrb.mxu0 %v243_v28 }
 0x10f   :  { %v358_v8 = vpack.i.bf16 %v135_v5, %v134_v4 }
 0x110   :  { %264 = vmatpush.msrb.mxu0 %v242_v29 }
 0x111   :  { %v355_v11 = vpop.permute.xlu1 %354  ;;  %359 = vrot.lane.b32.xlu2 %v358_v8, %s401_s27 }
 0x112   :  { %v357_v12 = vunpack.i.h.bf16 %v355_v11  ;;  %v356_v13 = vunpack.i.l.bf16 %v355_v11  ;;  %265 = vmatpush.msrb.mxu0 %v241_v30 }
 0x114   :  { %v131_v14 = vsel %vm129_vm1, %v356_v13, %v357_v12  ;;  %v133_v15 = vsel %vm129_vm1, %v357_v12, %v356_v13  ;;  %266 = vmatpush.msrb.mxu0 %v240_v31 }
 0x115   :  { %v136_v16 = vmax.f32 %v117_v36, %v131_v14  ;;  %v137_v17 = vmax.f32 %v118_v37, %v133_v15 }
 0x116   :  { %267 = vmatpush.msrb.mxu0 %v239_v46 }
 0x117   :  { %v363_v18 = vpack.i.bf16 %v137_v17, %v136_v16 }
 0x118   :  { %268 = vmatpush.msrb.mxu0 %v238_v47 }
 0x119   :  { %364 = vrot.lane.b32.xlu2 %v363_v18, %s401_s27 }
 0x11a   :  { %269 = vmatpush.msrb.mxu0 %v237_v48 }
 0x16b   :  { %v360_v32 = vpop.permute.xlu2 %359 }
 0x16c   :  { %v362_v33 = vunpack.i.h.bf16 %v360_v32  ;;  %v361_v34 = vunpack.i.l.bf16 %v360_v32 }
 0x16e   :  { %v147_v35 = vsel %vm146_vm2, %v361_v34, %v362_v33  ;;  %v149_v36 = vsel %vm146_vm2, %v362_v33, %v361_v34 }
 0x16f   :  { %v151_v37 = vmax.f32 %v134_v4, %v147_v35  ;;  %v152_v38 = vmax.f32 %v135_v5, %v149_v36 }
 0x171   :  { %203 = vmatmul.f32.vlgmr.msra.gmra.mxu2 %v151_v37  ;;  %226 = vmatmul.f32.vlgmr.msra.gmra.mxu3 %v152_v38 }
 0x173   :  { %v365_v39 = vpop.permute.xlu2 %364 }
 0x174   :  { %v367_v40 = vunpack.i.h.bf16 %v365_v39  ;;  %v366_v41 = vunpack.i.l.bf16 %v365_v39 }
 0x176   :  { %v148_v42 = vsel %vm146_vm2, %v366_v41, %v367_v40  ;;  %v150_v43 = vsel %vm146_vm2, %v367_v40, %v366_v41 }
 0x177   :  { %v153_v44 = vmax.f32 %v136_v16, %v148_v42  ;;  %v154_v45 = vmax.f32 %v137_v17, %v150_v43 }
 0x179   :  { %206 = vmatmul.f32.gmra.mxu2 %v153_v44  ;;  %229 = vmatmul.f32.gmra.mxu3 %v154_v45 }
 0x1f4   :  { %v204_v49 = vpop.f32.mrf.mxu2  ;;  %v227_v50 = vpop.f32.mrf.mxu3 }
 0x1f5   :  { %v228_v52 = vadd.f32 %v227_v50, %v204_v49 }
 0x1f7   :  { %v235_v53 = vmul.f32 %v233_v51, %v228_v52 }
 0x1f9   :  { %340 = vmatmul.msk.f32.vlgmr.msrb.gmra.mxu0 %vm247_vm3, %v235_v53 }
 0x1fc   :  { %v207_v54 = vpop.f32.mrf.mxu2  ;;  %v230_v55 = vpop.f32.mrf.mxu3 }
 0x1fd   :  { %v231_v57 = vadd.f32 %v230_v55, %v207_v54 }
 0x1ff   :  { %v236_v58 = vmul.f32 %v234_v56, %v231_v57 }
 0x201   :  { %341 = vmatmul.msk.f32.gmra.mxu0 %vm247_vm3, %v236_v58 }
 0x276   :  { %v271_v59 = vpop.f32.mrf.mxu0 }
 0x27e   :  { %v274_v60 = vpop.f32.mrf.mxu0 }
 0x27f   :  { %300 = vmatpush.msrb.mxu1 %v274_v60 }
 0x281   :  { %301 = vmatpush.msrb.mxu1 %v271_v59 }
 0x282   :  { %342 = vmatmul.msk.f32.vlgmr.msrb.gmra.mxu1 %vm282_vm4, %v277_v61 }
 0x2ff   :  { %v303_v63 = vpop.f32.mrf.mxu1 }
 0x300   :  { %v304_v0 = vadd.f32 %v368_v62, %v303_v63 }
 0x302   :  { %v307_v1 = vsel %vm306_vm5, %v304_v0, -inf }
 0x303   :  { %308 = vmax.xlane.f32.xlu0 %v307_v1 }
 0x376   :  { %v309_v2 = vpop.xlane.xlu0 %308 }
 0x377   :  { %v310_v3 = vsub.f32 %v304_v0, %v309_v2 }
 0x379   :  { %v311_v4 = vmul.f32 1.442695, %v310_v3 }
 0x37b   :  { %369 = vpow2.f32 %v311_v4 }
 0x381   :  { %v370_v5 = vpop.eup %369 }
 0x382   :  { %v313_v6 = vsel %vm306_vm5, %v370_v5, 0.0 }
 0x383   :  { %314 = vadd.xlane.f32.xlu1 %v313_v6 }
 0x3f6   :  { %v315_v7 = vpop.xlane.xlu1 %314 }
 0x3f7   :  { %371 = vlog2.f32 %v315_v7 }
 0x3fd   :  { %v372_v8 = vpop.eup %371 }
 0x3fe   :  { %v317_v9 = vmul.f32 0.6931472, %v372_v8 }
 0x400   :  { %v318_v10 = vsub.f32 %v310_v3, %v317_v9 }
 0x402   :  { %319 = vst.msk [vmem:[#allocation2] sm:$0x3] %vm306_vm5, %v318_v10 }
 0x403   :  { %330 = dma.vmem_to_hbm [thread:$0]  %s326_s6, 32, %s328_s20, [#allocation3]  }
 0x404   :  { %397 = dma.done.wait [#allocation3], 32  }
 0x405   :  { %398 = vsyncadd [#allocation3], 4294967264 }
 0x406   :  { %335 = vsyncpa [#allocation3], 1 }

</bundles_post_ra>
